<compile_context>
chip_gen: v5e
topology: v5e:2x2
jax: 0.10.0
libtpu: 0.0.40
codegen_flags: <defaults>
</compile_context>

<pallas_src>
import functools

import jax
import jax.numpy as jnp
from jax import lax
from jax.experimental import pallas as pl
from jax.experimental.pallas import tpu as pltpu


# ---------------------------------------------------------------------------
# Row-block picker: multiple-of-8 block that evenly divides n and stays under
# a VMEM byte budget.  Falls back to a full-extent block when n is not a
# multiple of 8 (legal for any n).
# ---------------------------------------------------------------------------
def _pick_row_block(n, dim, itemsize, *, max_block_bytes, max_rows):
    if n % 8 != 0:
        return n  # full-extent block along rows
    by_bytes = (max_block_bytes // max(1, dim * itemsize)) // 8 * 8
    bm = max(8, min(n, max_rows, max(8, by_bytes)))
    while n % bm != 0:
        bm -= 8
    return bm


# ---------------------------------------------------------------------------
# Kernel 1: elementwise sigmoid  (default path, max_classes=None)
#   sigmoid(x) = 0.5 * (tanh(0.5 * x) + 1)   -> single EUP op, no VALU divide
# ---------------------------------------------------------------------------
def _sigmoid_kernel(x_ref, o_ref):
    x = x_ref[...].astype(jnp.float32)
    o_ref[...] = (0.5 * (jnp.tanh(0.5 * x) + 1.0)).astype(o_ref.dtype)


def sigmoid_pallas(x):
    n, dim = x.shape
    # Elementwise: only needs 2x in + 2x out double-buffers -> big blocks,
    # few grid steps (grid steps are pure serial overhead on 1-TC chips).
    bm = _pick_row_block(n, dim, x.dtype.itemsize,
                         max_block_bytes=8 << 20, max_rows=4096)
    return pl.pallas_call(
        _sigmoid_kernel,
        out_shape=jax.ShapeDtypeStruct((n, dim), x.dtype),
        grid_spec=pltpu.PrefetchScalarGridSpec(
            num_scalar_prefetch=0,
            grid=(pl.cdiv(n, bm),),
            in_specs=[pl.BlockSpec((bm, dim), lambda i: (i, 0))],
            out_specs=pl.BlockSpec((bm, dim), lambda i: (i, 0)),
        ),
        compiler_params=pltpu.CompilerParams(
            dimension_semantics=("parallel",)),
    )(x)


# ---------------------------------------------------------------------------
# Kernel 2: differentiable_topk  (max_classes path)
#
#   result[r, c] = sum over k soft-argmax iterations of softmax(x_i / T)
#   scattered at that iteration's argmax column, where x_{i+1} masks the
#   selected column with -inf.
#
# Optimized formulation (exact, by softmax shift-invariance):
#   e     = exp((x/T) - max(x/T))          # computed once (EUP work / k)
#   denom = sum(e)
#   per iteration: top = max(e); onehot = (e == top);
#                  acc[onehot] = top / denom; e[onehot] = 0; denom -= top
# ---------------------------------------------------------------------------
def _diff_topk_kernel(x_ref, o_ref, *, k, temperature):
    x = x_ref[...].astype(jnp.float32) * jnp.float32(1.0 / temperature)

    m0 = jnp.max(x, axis=-1, keepdims=True)
    e = jnp.exp(x - m0)                                # full-array exp: ONCE
    denom = jnp.sum(e, axis=-1, keepdims=True)
    acc = jnp.zeros_like(e)

    if k <= 8:
        # Static unroll: LLO sees every iteration; final iter skips the
        # dead e-zeroing / denom update and stores straight to o_ref.
        for i in range(k):
            top = jnp.max(e, axis=-1, keepdims=True)   # single XLU reduce
            onehot = e == top                          # no argmax / no iota
            val = top / denom                          # (rows,1) divide
            sel = jnp.where(onehot, val, acc)          # fused select-write
            if i == k - 1:
                o_ref[...] = sel.astype(o_ref.dtype)
            else:
                acc = sel
                e = jnp.where(onehot, 0.0, e)
                denom = denom - top
    else:
        # Larger k: bounded-unroll fori_loop caps live ranges (no spill blowup).
        def body(_, carry):
            e_c, denom_c, acc_c = carry
            top = jnp.max(e_c, axis=-1, keepdims=True)
            onehot = e_c == top
            acc_c = jnp.where(onehot, top / denom_c, acc_c)
            e_c = jnp.where(onehot, 0.0, e_c)
            denom_c = denom_c - top
            return e_c, denom_c, acc_c

        _, _, acc = lax.fori_loop(0, k, body, (e, denom, acc), unroll=2)
        o_ref[...] = acc.astype(o_ref.dtype)


def differentiable_topk_pallas(x, k, temperature=1.0):
    n, dim = x.shape
    # NOTE: if k approaches the number of classes the running denominator can
    # underflow toward 0 (NaN/Inf); realistic max_classes << num_classes so
    # there is no runtime guard here.
    # Working set is ~7-9x the block (double-buffers + e/acc/onehot temps):
    # a 2 MiB block cap keeps it well inside v7x's 32 MiB scoped VMEM.
    bm = _pick_row_block(n, dim, jnp.dtype(jnp.float32).itemsize,
                         max_block_bytes=2 << 20, max_rows=512)
    kernel = functools.partial(_diff_topk_kernel, k=k, temperature=temperature)
    return pl.pallas_call(
        kernel,
        out_shape=jax.ShapeDtypeStruct((n, dim), x.dtype),
        grid_spec=pltpu.PrefetchScalarGridSpec(
            num_scalar_prefetch=0,
            grid=(pl.cdiv(n, bm),),
            in_specs=[pl.BlockSpec((bm, dim), lambda i: (i, 0))],
            out_specs=pl.BlockSpec((bm, dim), lambda i: (i, 0)),
        ),
        compiler_params=pltpu.CompilerParams(
            dimension_semantics=("parallel",)),
    )(x)


# ---------------------------------------------------------------------------
# Latents module (JAX / Pallas)
# ---------------------------------------------------------------------------
class Latents:
    def __init__(self, num_latents=15, num_classes=1000, z_dim=128,
                 max_classes=None, class_temperature=2.0,
                 key=jax.random.PRNGKey(0)):
        assert max_classes is None or (0 < max_classes <= num_classes)
        k1, k2 = jax.random.split(key)
        # torch.zeros(...).normal_(std=1)
        self.normu = jax.random.normal(k1, (num_latents, z_dim), jnp.float32)
        # torch.zeros(...).normal_(mean=-3.9, std=0.3)
        self.cls = jax.random.normal(
            k2, (num_latents, num_classes), jnp.float32) * 0.3 - 3.9
        self.thresh_lat = jnp.array(1, jnp.int32)   # registered buffer (unused)
        self.max_classes = max_classes
        self.class_temperature = class_temperature

    def __call__(self):
        if self.max_classes is not None:
            classes = differentiable_topk_pallas(
                self.cls, self.max_classes, self.class_temperature)
        else:
            classes = sigmoid_pallas(self.cls)
        return self.normu, classes


# ---------------------------------------------------------------------------
# Pure-JAX references (mirror the PyTorch code exactly)
# ---------------------------------------------------------------------------
def _ref_topk(x, k, temperature):
    acc = jnp.zeros_like(x)
    col = jnp.arange(x.shape[-1])[None, :]
    for i in range(k):
        sm = jax.nn.softmax(x / temperature, axis=-1)
        vals = jnp.max(sm, axis=-1, keepdims=True)
        idx = jnp.argmax(sm, axis=-1)[:, None]
        onehot = col == idx
        acc = acc + jnp.where(onehot, vals, 0.0)
        if i != k - 1:
            x = jnp.where(onehot, -jnp.inf, x)
    return acc


if __name__ == "__main__":
    key = jax.random.PRNGKey(0)

    # --- Config A: (8,128)-aligned shapes, default path (sigmoid) ----------
    model = Latents(num_latents=16, num_classes=256, z_dim=32, key=key)
    normu, classes = model()
    jax.block_until_ready((normu, classes))
    assert normu.shape == (16, 32) and classes.shape == (16, 256)
    assert jnp.allclose(classes, jax.nn.sigmoid(model.cls), atol=1e-5), \
        "sigmoid path mismatch (aligned shapes)"

    # --- Config A: max_classes path ----------------------------------------
    model_k = Latents(num_latents=16, num_classes=256, z_dim=32,
                      max_classes=3, class_temperature=2.0, key=key)
    _, classes_k = model_k()
    jax.block_until_ready(classes_k)
    assert jnp.allclose(classes_k, _ref_topk(model_k.cls, 3, 2.0),
                        atol=1e-5), "topk path mismatch (aligned shapes)"

    # --- Config B: real BigGAN defaults (15 x 1000, non-(8,128) multiples) --
    model_b = Latents(num_latents=15, num_classes=1000, z_dim=128,
                      max_classes=3, class_temperature=2.0, key=key)
    normu_b, classes_b = model_b()
    jax.block_until_ready((normu_b, classes_b))
    assert normu_b.shape == (15, 128) and classes_b.shape == (15, 1000)
    assert jnp.allclose(classes_b, _ref_topk(model_b.cls, 3, 2.0),
                        atol=1e-5), "topk path mismatch (1000 classes)"

    model_b_sig = Latents(num_latents=15, num_classes=1000, z_dim=128, key=key)
    _, classes_b_sig = model_b_sig()
    jax.block_until_ready(classes_b_sig)
    assert jnp.allclose(classes_b_sig, jax.nn.sigmoid(model_b_sig.cls),
                        atol=1e-5), "sigmoid path mismatch (1000 classes)"

    print("KERNEL_OK")
</pallas_src>

<mosaic_0001>
module attributes {stable_mosaic.version = 11 : i64} {
  func.func @_sigmoid_kernel(%arg0: i32, %arg1: memref<16x256xf32, #tpu.memory_space<vmem>>, %arg2: memref<16x256xf32, #tpu.memory_space<vmem>>) attributes {dimension_semantics = [#tpu.dimension_semantics<parallel>], iteration_bounds = array<i64: 1>, scalar_prefetch = 0 : i64, scratch_operands = 0 : i64, tpu.core_type = #tpu.core_type<tc>, window_params = [{transform_indices = @transform_0, window_bounds = array<i64: 16, 256>}, {transform_indices = @transform_1, window_bounds = array<i64: 16, 256>}]} {
    %c0 = arith.constant 0 : index
    %c0_0 = arith.constant 0 : index
    %0 = vector.load %arg1[%c0, %c0_0] : memref<16x256xf32, #tpu.memory_space<vmem>>, vector<16x256xf32>
    %cst = arith.constant 5.000000e-01 : f32
    %1 = vector.broadcast %cst : f32 to vector<16x256xf32>
    %2 = arith.mulf %1, %0 : vector<16x256xf32>
    %3 = math.tanh %2 : vector<16x256xf32>
    %cst_1 = arith.constant 1.000000e+00 : f32
    %4 = vector.broadcast %cst_1 : f32 to vector<16x256xf32>
    %5 = arith.addf %3, %4 : vector<16x256xf32>
    %cst_2 = arith.constant 5.000000e-01 : f32
    %6 = vector.broadcast %cst_2 : f32 to vector<16x256xf32>
    %7 = arith.mulf %6, %5 : vector<16x256xf32>
    %c0_3 = arith.constant 0 : index
    %c0_4 = arith.constant 0 : index
    %8 = vector.load %arg2[%c0_3, %c0_4] : memref<16x256xf32, #tpu.memory_space<vmem>>, vector<16x256xf32>
    tpu.vector_store %arg2[%c0_3, %c0_4], %7 {strides = array<i32>} : memref<16x256xf32, #tpu.memory_space<vmem>>, vector<16x256xf32>,
    return
  }
  func.func @transform_0(%arg0: i32) -> (i32, i32) {
    %c0_i32 = arith.constant 0 : i32
    %c0_i32_0 = arith.constant 0 : i32
    return %arg0, %c0_i32 : i32, i32
  }
  func.func @transform_1(%arg0: i32) -> (i32, i32) {
    %c0_i32 = arith.constant 0 : i32
    %c0_i32_0 = arith.constant 0 : i32
    return %arg0, %c0_i32 : i32, i32
  }
}

</mosaic_0001>

<bundles_post_ra>
// kernel: tpu_custom_call.1
= control target key start
LH: loop header
LB: loop body
LE: loop exit
PB: predicated region body
PF: predicated region fallthrough
CT: control target
= control target key end

     0   :  { %6 = vsyncpa [#allocation3], 0  ;;  %s158_s0 = inlined_call_operand.hbm [shape: f32[16,256], index: 0, kind: input, shape index: {}]   ;;  %s159_s1 = inlined_call_operand.hbm [shape: f32[16,256], index: 1, kind: output, shape index: {}]  }
   0x1   :  { %7 = vsyncpa [#allocation4], 0  ;;  %s12_s8 = sshll.u32 %s158_s0, 4  ;;  %s132_s9 = smov [#allocation2]   ;;  %s13_s8 = int_to_ptr.hbm [resolvable:$true] %s12_s8 }
   0x2   :  { %s14_s10 = sshll.u32 %s132_s9, 4  ;;  %s133_s11 = smov 256   ;;  %s15_s10 = int_to_ptr.vmem [resolvable:$true] %s14_s10 }
   0x3   :  { %s134_s12 = smov 16  }
   0x4   :  { %20 = dma.hbm_to_vmem [thread:$0]  %s13_s8, 512, %s15_s10, [#allocation3], %s133_s11, %s133_s11, %s134_s12  }
   0x5   :  { %128 = dma.done.wait [#allocation3], 512  }
   0x6   :  { %129 = vsyncadd [#allocation3], 4294966784  ;;  %v25_v0 = vld [vmem:[#allocation2] sm:$0xff]  ;;  %v26_v1 = vld [vmem:[#allocation2 + $0x8] sm:$0xff]  ;;  %s135_s0 = smov [#allocation5]   ;;  %s55_s16 = sshll.u32 %s159_s1, 4  ;;  %s56_s16 = int_to_ptr.hbm [resolvable:$true] %s55_s16 }
   0x7   :  { %v27_v2 = vld [vmem:[#allocation2 + $0x10] sm:$0xff]  ;;  %v29_v3 = vmul.f32 0.5, %v25_v0  ;;  %v30_v4 = vmul.f32 0.5, %v26_v1  ;;  %v28_v6 = vld [vmem:[#allocation2 + $0x18] sm:$0xff]  ;;  %s53_s13 = sshll.u32 %s135_s0, 4  ;;  %s54_s13 = int_to_ptr.vmem [resolvable:$true] %s53_s13 }
   0x8   :  { %v31_v5 = vmul.f32 0.5, %v27_v2  ;;  %v32_v7 = vmul.f32 0.5, %v28_v6 }
   0x9   :  { %72 = vtanh.f32 %v29_v3 }
   0xa   :  { %74 = vtanh.f32 %v30_v4 }
   0xb   :  { %76 = vtanh.f32 %v31_v5 }
   0xc   :  { %78 = vtanh.f32 %v32_v7 }
   0xf   :  { %v73_v8 = vpop.eup %72 }
  0x10   :  { %v75_v9 = vpop.eup %74  ;;  %v37_v10 = vadd.f32 1.0, %v73_v8 }
  0x11   :  { %v77_v11 = vpop.eup %76  ;;  %v38_v12 = vadd.f32 1.0, %v75_v9 }
  0x12   :  { %v79_v13 = vpop.eup %78  ;;  %v41_v14 = vmul.f32 0.5, %v37_v10  ;;  %v39_v15 = vadd.f32 1.0, %v77_v11 }
  0x13   :  { %v42_v16 = vmul.f32 0.5, %v38_v12  ;;  %v40_v17 = vadd.f32 1.0, %v79_v13 }
  0x14   :  { %45 = vst [vmem:[#allocation5] sm:$0xff] %v41_v14  ;;  %v43_v18 = vmul.f32 0.5, %v39_v15 }
  0x15   :  { %46 = vst [vmem:[#allocation5 + $0x8] sm:$0xff] %v42_v16  ;;  %v44_v19 = vmul.f32 0.5, %v40_v17 }
  0x16   :  { %47 = vst [vmem:[#allocation5 + $0x10] sm:$0xff] %v43_v18 }
  0x17   :  { %48 = vst [vmem:[#allocation5 + $0x18] sm:$0xff] %v44_v19 }
  0x18   :  { %61 = dma.vmem_to_hbm [thread:$0]  %s54_s13, 512, %s56_s16, [#allocation4], %s133_s11, %s133_s11, %s134_s12  }
  0x19   :  { %130 = dma.done.wait [#allocation4], 512  }
  0x1a   :  { %131 = vsyncadd [#allocation4], 4294966784 }
  0x1b   :  { %66 = vsyncpa [#allocation3], 1 }
  0x1c   :  { %67 = vsyncpa [#allocation4], 1 }

</bundles_post_ra>
